<compile_context>
chip_gen: v6e
topology: v6e:2x2x1
jax: 0.10.0
libtpu: 0.0.40
codegen_flags: <defaults>
</compile_context>

<pallas_src>
import functools

import numpy as np
import jax
import jax.numpy as jnp
from jax.experimental import pallas as pl
from jax.experimental.pallas import tpu as pltpu


# ----------------------------------------------------------------------------
# Deterministic parameter init mirroring layer_init (orthogonal * std, bias=0)
# ----------------------------------------------------------------------------
def orthogonal_(shape, gain, rng):
    """Orthogonal init equivalent to torch.nn.init.orthogonal_ for a 2D weight."""
    rows, cols = shape
    flat = rng.standard_normal((rows, cols)).astype(np.float64)
    if rows < cols:
        flat = flat.T
    q, r = np.linalg.qr(flat)
    d = np.sign(np.diag(r))          # sign convention used by PyTorch
    q = q * d[None, :]
    if rows < cols:
        q = q.T
    return (gain * q[:rows, :cols]).astype(np.float32)


def make_params(N, hidden=56, seed=0):
    """Unpadded parameters, (in, out) layout, matching the PyTorch module."""
    rng = np.random.default_rng(seed)
    gain = np.sqrt(2.0)
    w1 = orthogonal_((hidden, N), gain, rng).T        # (N, 56)
    b1 = np.zeros((1, hidden), np.float32)            # (1, 56)
    w2 = orthogonal_((hidden, hidden), gain, rng).T   # (56, 56)
    b2 = np.zeros((1, hidden), np.float32)            # (1, 56)
    w3 = orthogonal_((N, hidden), gain, rng).T        # (56, N)
    b3 = np.zeros((1, N), np.float32)                 # (1, N)
    return tuple(jnp.asarray(a) for a in (w1, b1, w2, b2, w3, b3))


def _round_up(a, m):
    return (a + m - 1) // m * m


def prepare_params(params, *, hidden_pad=64, mxu_dtype=jnp.bfloat16):
    """One-time parameter prep for the kernel:
      * zero-pad the hidden dim 56 -> hidden_pad (bit-identical output),
      * build block-diagonal weights for the 4x lane fold (N=32 -> 128 lanes),
      * cast the MXU operands (weights) to mxu_dtype once; biases stay f32.
    """
    w1, b1, w2, b2, w3, b3 = params
    N = w1.shape[0]
    fold = max(1, 128 // N)                 # 4 for N=32 -> 128-lane rows
    p = hidden_pad - w1.shape[1]
    if p > 0:
        w1 = jnp.pad(w1, ((0, 0), (0, p)))  # (N, H)
        b1 = jnp.pad(b1, ((0, 0), (0, p)))  # (1, H)
        w2 = jnp.pad(w2, ((0, p), (0, p)))  # (H, H)
        b2 = jnp.pad(b2, ((0, 0), (0, p)))  # (1, H)
        w3 = jnp.pad(w3, ((0, p), (0, 0)))  # (H, N)

    def block_diag(w, k):
        r, c = w.shape
        out = jnp.zeros((k * r, k * c), w.dtype)
        for i in range(k):
            out = out.at[i * r:(i + 1) * r, i * c:(i + 1) * c].set(w)
        return out

    w1_bd = block_diag(w1, fold).astype(mxu_dtype)   # (fold*N, fold*H)
    w2_bd = block_diag(w2, fold).astype(mxu_dtype)   # (fold*H, fold*H)
    w3_bd = block_diag(w3, fold).astype(mxu_dtype)   # (fold*H, fold*N)
    b1_bd = jnp.tile(b1, (1, fold))                  # (1, fold*H), f32
    b2_bd = jnp.tile(b2, (1, fold))                  # (1, fold*H), f32
    b3_bd = jnp.tile(b3, (1, fold))                  # (1, fold*N), f32
    return (w1_bd, b1_bd, w2_bd, b2_bd, w3_bd, b3_bd)


def _default_act_dtype():
    """bf16 bias/tanh only where the VPU/EUP support it (v6e / v7x)."""
    try:
        kind = jax.devices()[0].device_kind.lower()
    except Exception:
        return jnp.float32
    if "v6" in kind or "v7" in kind:
        return jnp.bfloat16
    return jnp.float32


# ----------------------------------------------------------------------------
# Pallas kernel: fused 3-layer MLP with tanh activations (lane-folded)
# ----------------------------------------------------------------------------
def sampler_mlp_kernel(x_ref, w1_ref, b1_ref, w2_ref, b2_ref, w3_ref, b3_ref,
                       o_ref, *, act_dtype):
    mm_dtype = w1_ref.dtype                 # MXU operand dtype (f32 or bf16)
    # In-kernel cast of x (near-free VPU op, hidden under the pipeline).
    x = x_ref[...].astype(mm_dtype)
    # MXU matmuls accumulate in f32; bias-add stays f32, tanh runs in
    # act_dtype (bf16 on v6e/v7x, f32 on v5e / exact path).
    h1 = jnp.dot(x, w1_ref[...], preferred_element_type=jnp.float32) + b1_ref[...]
    h1 = jnp.tanh(h1.astype(act_dtype))
    h2 = jnp.dot(h1.astype(mm_dtype), w2_ref[...],
                 preferred_element_type=jnp.float32) + b2_ref[...]
    h2 = jnp.tanh(h2.astype(act_dtype))
    out = jnp.dot(h2.astype(mm_dtype), w3_ref[...],
                  preferred_element_type=jnp.float32) + b3_ref[...]
    o_ref[...] = out.astype(o_ref.dtype)


def sampler_forward(x, prepared_params, *, act_dtype=None,
                    max_folded_tile=2048, interpret=False):
    """x: (B, N) f32.  prepared_params: output of prepare_params()."""
    w1, b1, w2, b2, w3, b3 = prepared_params
    B, N = x.shape
    N_fold = w1.shape[0]                    # fold * N   (128 for N=32)
    H_fold = w1.shape[1]                    # fold * H   (256)
    fold = N_fold // N
    out_dtype = x.dtype

    if act_dtype is None:
        # Exact f32-MXU path keeps activations f32; bf16 path picks per-chip.
        act_dtype = jnp.float32 if w1.dtype == jnp.float32 else _default_act_dtype()

    # ----- batch tiling on folded rows ------------------------------------
    Bf = pl.cdiv(B, fold)                   # folded rows actually needed
    if Bf <= 8:
        tile = 8                            # tiny batch: one minimal tile
    else:
        # >= 2 parallel grid steps (v7x megacore), capped at 2048 folded rows
        # (= 8192 original rows, ~1 MiB f32 per x/out tile).
        tile = min(max_folded_tile, _round_up(pl.cdiv(Bf, 2), 8))
    Bf_pad = _round_up(Bf, tile)
    B_pad = Bf_pad * fold

    # Pad only the ragged tail (no-op when B is already a tile multiple).
    x_p = x if B_pad == B else jnp.pad(x, ((0, B_pad - B), (0, 0)))
    # Free row-major reshape: (B_pad, N) -> (B_pad/fold, fold*N) 128-lane rows.
    x_fold = x_p.reshape(Bf_pad, N_fold)

    grid = (Bf_pad // tile,)
    row_spec = pl.BlockSpec((tile, N_fold), lambda i: (i, 0))
    const = lambda shape: pl.BlockSpec(shape, lambda i: (0, 0))

    out_fold = pl.pallas_call(
        functools.partial(sampler_mlp_kernel, act_dtype=act_dtype),
        out_shape=jax.ShapeDtypeStruct((Bf_pad, N_fold), out_dtype),
        grid_spec=pltpu.PrefetchScalarGridSpec(
            num_scalar_prefetch=0,
            grid=grid,
            in_specs=[
                row_spec,                    # x (folded rows)
                const((N_fold, H_fold)),     # w1 block-diag
                const((1, H_fold)),          # b1 tiled
                const((H_fold, H_fold)),     # w2 block-diag
                const((1, H_fold)),          # b2 tiled
                const((H_fold, N_fold)),     # w3 block-diag
                const((1, N_fold)),          # b3 tiled
            ],
            out_specs=row_spec,
        ),
        compiler_params=pltpu.CompilerParams(
            dimension_semantics=("parallel",)),
        interpret=interpret,
    )(x_fold, w1, b1, w2, b2, w3, b3)

    out = out_fold.reshape(B_pad, N)
    return out if B_pad == B else out[:B]
    # TODO(synk): if the consumer tolerates bf16 outputs, emit out_dtype=bf16
    # to halve output HBM traffic at very large batch (memory-bound regime).


# ----------------------------------------------------------------------------
# Pure-JAX reference (unpadded, f32) for correctness check
# ----------------------------------------------------------------------------
def sampler_forward_ref(x, params):
    w1, b1, w2, b2, w3, b3 = params
    h1 = jnp.tanh(x @ w1 + b1)
    h2 = jnp.tanh(h1 @ w2 + b2)
    return h2 @ w3 + b3


if __name__ == "__main__":
    N = 32       # feature / action dimension of the Sampler
    B = 16       # batch of observations

    raw_params = make_params(N, hidden=56, seed=0)           # exact module params
    params_f32 = prepare_params(raw_params, mxu_dtype=jnp.float32)
    params_bf16 = prepare_params(raw_params, mxu_dtype=jnp.bfloat16)

    key = jax.random.PRNGKey(0)
    x = jax.random.normal(key, (B, N), dtype=jnp.float32)

    ref = sampler_forward_ref(x, raw_params)

    # Exact-precision path: f32 MXU operands + f32 activations; verifies that
    # the 56->64 hidden padding and the 4x block-diagonal lane fold are no-ops.
    out_f32 = jax.block_until_ready(sampler_forward(x, params_f32))
    np.testing.assert_allclose(np.asarray(out_f32), np.asarray(ref),
                               rtol=1e-5, atol=1e-5)

    # Fast path: bf16 MXU operands, f32 accumulation, bf16 tanh on v6e/v7x
    # (f32 tanh on v5e), f32 output.
    out_bf16 = jax.block_until_ready(sampler_forward(x, params_bf16))
    np.testing.assert_allclose(np.asarray(out_bf16), np.asarray(ref),
                               rtol=5e-2, atol=1e-1)

    print("KERNEL_OK")
</pallas_src>

<mosaic_0001>
module attributes {stable_mosaic.version = 11 : i64} {
  func.func @sampler_mlp_kernel(%arg0: i32, %arg1: memref<8x128xf32, #tpu.memory_space<vmem>>, %arg2: memref<128x256xf32, #tpu.memory_space<vmem>>, %arg3: memref<1x256xf32, #tpu.memory_space<vmem>>, %arg4: memref<256x256xf32, #tpu.memory_space<vmem>>, %arg5: memref<1x256xf32, #tpu.memory_space<vmem>>, %arg6: memref<256x128xf32, #tpu.memory_space<vmem>>, %arg7: memref<1x128xf32, #tpu.memory_space<vmem>>, %arg8: memref<8x128xf32, #tpu.memory_space<vmem>>) attributes {dimension_semantics = [#tpu.dimension_semantics<parallel>], iteration_bounds = array<i64: 1>, scalar_prefetch = 0 : i64, scratch_operands = 0 : i64, tpu.core_type = #tpu.core_type<tc>, window_params = [{transform_indices = @transform_0, window_bounds = array<i64: 8, 128>}, {pipeline_mode = #tpu.pipeline_mode<synchronous>, transform_indices = @transform_1, window_bounds = array<i64: 128, 256>}, {pipeline_mode = #tpu.pipeline_mode<synchronous>, transform_indices = @transform_2, window_bounds = array<i64: 1, 256>}, {pipeline_mode = #tpu.pipeline_mode<synchronous>, transform_indices = @transform_3, window_bounds = array<i64: 256, 256>}, {pipeline_mode = #tpu.pipeline_mode<synchronous>, transform_indices = @transform_4, window_bounds = array<i64: 1, 256>}, {pipeline_mode = #tpu.pipeline_mode<synchronous>, transform_indices = @transform_5, window_bounds = array<i64: 256, 128>}, {pipeline_mode = #tpu.pipeline_mode<synchronous>, transform_indices = @transform_6, window_bounds = array<i64: 1, 128>}, {transform_indices = @transform_7, window_bounds = array<i64: 8, 128>}]} {
    %c0 = arith.constant 0 : index
    %c0_0 = arith.constant 0 : index
    %0 = vector.load %arg1[%c0, %c0_0] : memref<8x128xf32, #tpu.memory_space<vmem>>, vector<8x128xf32>
    %c0_1 = arith.constant 0 : index
    %c0_2 = arith.constant 0 : index
    %1 = vector.load %arg2[%c0_1, %c0_2] : memref<128x256xf32, #tpu.memory_space<vmem>>, vector<128x256xf32>
    %cst = arith.constant dense<0.000000e+00> : vector<8x256xf32>
    %2 = tpu.matmul %0, %1, %cst {dimension_numbers = #tpu.dot_dimension_numbers<[1], [0], [0], [1], [0, 0, 1, 1], [], []>} : vector<8x128xf32>, vector<128x256xf32>, vector<8x256xf32> -> vector<8x256xf32>
    %c0_3 = arith.constant 0 : index
    %c0_4 = arith.constant 0 : index
    %3 = vector.load %arg3[%c0_3, %c0_4] : memref<1x256xf32, #tpu.memory_space<vmem>>, vector<1x256xf32>
    %4 = vector.broadcast %3 : vector<1x256xf32> to vector<8x256xf32>
    %5 = arith.addf %2, %4 : vector<8x256xf32>
    %6 = math.tanh %5 : vector<8x256xf32>
    %c0_5 = arith.constant 0 : index
    %c0_6 = arith.constant 0 : index
    %7 = vector.load %arg4[%c0_5, %c0_6] : memref<256x256xf32, #tpu.memory_space<vmem>>, vector<256x256xf32>
    %cst_7 = arith.constant dense<0.000000e+00> : vector<8x256xf32>
    %8 = tpu.matmul %6, %7, %cst_7 {dimension_numbers = #tpu.dot_dimension_numbers<[1], [0], [0], [1], [0, 0, 1, 1], [], []>} : vector<8x256xf32>, vector<256x256xf32>, vector<8x256xf32> -> vector<8x256xf32>
    %c0_8 = arith.constant 0 : index
    %c0_9 = arith.constant 0 : index
    %9 = vector.load %arg5[%c0_8, %c0_9] : memref<1x256xf32, #tpu.memory_space<vmem>>, vector<1x256xf32>
    %10 = vector.broadcast %9 : vector<1x256xf32> to vector<8x256xf32>
    %11 = arith.addf %8, %10 : vector<8x256xf32>
    %12 = math.tanh %11 : vector<8x256xf32>
    %c0_10 = arith.constant 0 : index
    %c0_11 = arith.constant 0 : index
    %13 = vector.load %arg6[%c0_10, %c0_11] : memref<256x128xf32, #tpu.memory_space<vmem>>, vector<256x128xf32>
    %cst_12 = arith.constant dense<0.000000e+00> : vector<8x128xf32>
    %14 = tpu.matmul %12, %13, %cst_12 {dimension_numbers = #tpu.dot_dimension_numbers<[1], [0], [0], [1], [0, 0, 1, 1], [], []>} : vector<8x256xf32>, vector<256x128xf32>, vector<8x128xf32> -> vector<8x128xf32>
    %c0_13 = arith.constant 0 : index
    %c0_14 = arith.constant 0 : index
    %15 = vector.load %arg7[%c0_13, %c0_14] : memref<1x128xf32, #tpu.memory_space<vmem>>, vector<1x128xf32>
    %16 = vector.broadcast %15 : vector<1x128xf32> to vector<8x128xf32>
    %17 = arith.addf %14, %16 : vector<8x128xf32>
    %c0_15 = arith.constant 0 : index
    %c0_16 = arith.constant 0 : index
    %18 = vector.load %arg8[%c0_15, %c0_16] : memref<8x128xf32, #tpu.memory_space<vmem>>, vector<8x128xf32>
    tpu.vector_store %arg8[%c0_15, %c0_16], %17 {strides = array<i32>} : memref<8x128xf32, #tpu.memory_space<vmem>>, vector<8x128xf32>,
    return
  }
  func.func @transform_0(%arg0: i32) -> (i32, i32) {
    %c0_i32 = arith.constant 0 : i32
    %c0_i32_0 = arith.constant 0 : i32
    return %arg0, %c0_i32 : i32, i32
  }
  func.func @transform_1(%arg0: i32) -> (i32, i32) {
    %c0_i32 = arith.constant 0 : i32
    %c0_i32_0 = arith.constant 0 : i32
    %c0_i32_1 = arith.constant 0 : i32
    return %c0_i32, %c0_i32_0 : i32, i32
  }
  func.func @transform_2(%arg0: i32) -> (i32, i32) {
    %c0_i32 = arith.constant 0 : i32
    %c0_i32_0 = arith.constant 0 : i32
    %c0_i32_1 = arith.constant 0 : i32
    return %c0_i32, %c0_i32_0 : i32, i32
  }
  func.func @transform_3(%arg0: i32) -> (i32, i32) {
    %c0_i32 = arith.constant 0 : i32
    %c0_i32_0 = arith.constant 0 : i32
    %c0_i32_1 = arith.constant 0 : i32
    return %c0_i32, %c0_i32_0 : i32, i32
  }
  func.func @transform_4(%arg0: i32) -> (i32, i32) {
    %c0_i32 = arith.constant 0 : i32
    %c0_i32_0 = arith.constant 0 : i32
    %c0_i32_1 = arith.constant 0 : i32
    return %c0_i32, %c0_i32_0 : i32, i32
  }
  func.func @transform_5(%arg0: i32) -> (i32, i32) {
    %c0_i32 = arith.constant 0 : i32
    %c0_i32_0 = arith.constant 0 : i32
    %c0_i32_1 = arith.constant 0 : i32
    return %c0_i32, %c0_i32_0 : i32, i32
  }
  func.func @transform_6(%arg0: i32) -> (i32, i32) {
    %c0_i32 = arith.constant 0 : i32
    %c0_i32_0 = arith.constant 0 : i32
    %c0_i32_1 = arith.constant 0 : i32
    return %c0_i32, %c0_i32_0 : i32, i32
  }
  func.func @transform_7(%arg0: i32) -> (i32, i32) {
    %c0_i32 = arith.constant 0 : i32
    %c0_i32_0 = arith.constant 0 : i32
    return %arg0, %c0_i32 : i32, i32
  }
}

</mosaic_0001>

<bundles_post_ra>
// kernel: tpu_custom_call.1
= control target key start
LH: loop header
LB: loop body
LE: loop exit
PB: predicated region body
PF: predicated region fallthrough
CT: control target
= control target key end

     0   :  { %12 = vsyncpa [#allocation3], 0  ;;  %s710_s0 = inlined_call_operand.hbm [shape: f32[8,128], index: 0, kind: input, shape index: {}]   ;;  %s711_s1 = inlined_call_operand.hbm [shape: f32[128,256], index: 1, kind: input, shape index: {}]   ;;  %s712_s2 = inlined_call_operand.vmem [shape: f32[1,256], index: 2, kind: input, shape index: {}]   ;;  %s713_s3 = inlined_call_operand.hbm [shape: f32[256,256], index: 3, kind: input, shape index: {}]   ;;  %s714_s4 = inlined_call_operand.vmem [shape: f32[1,256], index: 4, kind: input, shape index: {}]   ;;  %s715_s5 = inlined_call_operand.hbm [shape: f32[256,128], index: 5, kind: input, shape index: {}]   ;;  %s716_s6 = inlined_call_operand.vmem [shape: f32[1,128], index: 6, kind: input, shape index: {}]   ;;  %s717_s7 = inlined_call_operand.hbm [shape: f32[8,128], index: 7, kind: output, shape index: {}]  }
   0x1   :  { %13 = vsyncpa [#allocation6], 0 }
   0x2   :  { %14 = vsyncpa [#allocation9], 0 }
   0x3   :  { %15 = vsyncpa [#allocation4], 0  ;;  %s636_s24 = smov [#allocation5]  }
   0x4   :  { %s31_s25 = sshll.u32 %s636_s24, 4  ;;  %s32_s25 = int_to_ptr.vmem [resolvable:$true] %s31_s25 }
   0x5   :  { %s536_s26 = scalar_lea.vmem %s32_s25, 4096  ;;  %p541_p1 = scmp.lt.s32.totalorder %s32_s25, %s32_s25 }
   0x6   :  { %p537_p0 = scmp.ne.s32.totalorder %s32_s25, %s536_s26  ;;  %p542_p2 = scmp.lt.s32.totalorder %s536_s26, %s536_s26 }
   0x8   :  { %p543_p3 = por %p542_p2, %p541_p1 }
   0xa   :  { %p544_p4 = pnand %p543_p3, %p537_p0 }
   0xc   :  { %547 = shalt.err (!%p544_p4)
}
   0xd   :  { %s637_s27 = smov 256   ;;  %s638_s28 = smov 16  }
   0xe   :  { %37 = dma.hbm_to_vmem [thread:$0]  %s711_s1, 4096, %s32_s25, [#allocation6], %s637_s27, %s637_s27, %s638_s28  }
   0xf   :  { %s639_s8 = smov [#allocation2]   ;;  %s640_s10 = smov [#allocation7]  }
  0x10   :  { %s22_s9 = sshll.u32 %s639_s8, 4  ;;  %s45_s11 = sshll.u32 %s640_s10, 4  ;;  %s23_s9 = int_to_ptr.vmem [resolvable:$true] %s22_s9  ;;  %s46_s11 = int_to_ptr.vmem [resolvable:$true] %s45_s11 }
  0x11   :  { %s556_s12 = scalar_lea.vmem %s23_s9, 128  ;;  %p561_p6 = scmp.lt.s32.totalorder %s23_s9, %s23_s9 }
  0x12   :  { %p557_p5 = scmp.ne.s32.totalorder %s23_s9, %s556_s12  ;;  %p562_p7 = scmp.lt.s32.totalorder %s556_s12, %s556_s12 }
  0x14   :  { %p563_p8 = por %p562_p7, %p561_p6 }
  0x16   :  { %p564_p9 = pnand %p563_p8, %p557_p5 }
  0x18   :  { %567 = shalt.err (!%p564_p9)
}
  0x19   :  { %25 = dma.hbm_to_vmem [thread:$0]  %s710_s0, 128, %s23_s9, [#allocation3]  }
  0x1a   :  { %s576_s15 = scalar_lea.vmem %s46_s11, 8192  ;;  %p581_p11 = scmp.lt.s32.totalorder %s46_s11, %s46_s11 }
  0x1b   :  { %p577_p10 = scmp.ne.s32.totalorder %s46_s11, %s576_s15  ;;  %p582_p12 = scmp.lt.s32.totalorder %s576_s15, %s576_s15 }
  0x1d   :  { %p583_p13 = por %p582_p12, %p581_p11 }
  0x1f   :  { %p584_p0 = pnand %p583_p13, %p577_p10 }
  0x21   :  { %587 = shalt.err (!%p584_p0)
}
  0x22   :  { %51 = dma.hbm_to_vmem [thread:$0]  %s713_s3, 8192, %s46_s11, [#allocation6], %s637_s27, %s637_s27, %s638_s28  }
  0x23   :  { %s641_s17 = smov [#allocation8]  }
  0x24   :  { %s59_s18 = sshll.u32 %s641_s17, 4  ;;  %s60_s18 = int_to_ptr.vmem [resolvable:$true] %s59_s18 }
  0x25   :  { %s596_s19 = scalar_lea.vmem %s60_s18, 4096  ;;  %p601_p2 = scmp.lt.s32.totalorder %s60_s18, %s60_s18 }
  0x26   :  { %p597_p1 = scmp.ne.s32.totalorder %s60_s18, %s596_s19  ;;  %p602_p3 = scmp.lt.s32.totalorder %s596_s19, %s596_s19 }
  0x28   :  { %p603_p4 = por %p602_p3, %p601_p2 }
  0x2a   :  { %p604_p5 = pnand %p603_p4, %p597_p1 }
  0x2c   :  { %607 = shalt.err (!%p604_p5)
}
  0x2d   :  { %s642_s0 = smov 128   ;;  %s643_s20 = smov 8  }
  0x2e   :  { %65 = dma.hbm_to_vmem [thread:$0]  %s715_s5, 4096, %s60_s18, [#allocation9], %s642_s0, %s642_s0, %s643_s20  }
  0x2f   :  { %628 = dma.done.wait [#allocation3], 128  }
  0x30   :  { %629 = vsyncadd [#allocation3], 4294967168 }
  0x31   :  { %630 = dma.done.wait [#allocation6], 12288  }
  0x32   :  { %631 = vsyncadd [#allocation6], 4294955008 }
  0x33   :  { %632 = dma.done.wait [#allocation9], 4096  }
  0x34   :  { %633 = vsyncadd [#allocation9], 4294963200  ;;  %v644_v0 = vmov 0.0   ;;  %v112_v1 = vld [vmem:[#allocation5 + $0xf8] sm:$0xff]  ;;  %v111_v2 = vld [vmem:[#allocation5 + $0xf0] sm:$0xff]  ;;  %s645_s26 = smov [#allocation10]  }
  0x35   :  { %189 = vmatprep.mubr.f32.mxu0 %v644_v0  ;;  %v110_v3 = vld [vmem:[#allocation5 + $0xe8] sm:$0xff]  ;;  %125 = vmatprep.subr.mxu0 %v112_v1  ;;  %v109_v4 = vld [vmem:[#allocation5 + $0xe0] sm:$0xff]  ;;  %v108_v5 = vld [vmem:[#allocation5 + $0xd8] sm:$0xff] }
  0x36   :  { %126 = vmatpush1.msra.mxu0 %v111_v2  ;;  %v107_v6 = vld [vmem:[#allocation5 + $0xd0] sm:$0xff]  ;;  %v106_v7 = vld [vmem:[#allocation5 + $0xc8] sm:$0xff]  ;;  %v105_v8 = vld [vmem:[#allocation5 + $0xc0] sm:$0xff] }
  0x37   :  { %127 = vmatprep.subr.mxu0 %v110_v3  ;;  %v104_v9 = vld [vmem:[#allocation5 + $0xb8] sm:$0xff]  ;;  %v103_v10 = vld [vmem:[#allocation5 + $0xb0] sm:$0xff]  ;;  %v102_v11 = vld [vmem:[#allocation5 + $0xa8] sm:$0xff] }
  0x38   :  { %128 = vmatpush1.msra.mxu0 %v109_v4  ;;  %v101_v12 = vld [vmem:[#allocation5 + $0xa0] sm:$0xff]  ;;  %v100_v13 = vld [vmem:[#allocation5 + $0x98] sm:$0xff]  ;;  %v99_v14 = vld [vmem:[#allocation5 + $0x90] sm:$0xff] }
  0x39   :  { %129 = vmatprep.subr.mxu0 %v108_v5  ;;  %v229_v15 = vld [vmem:[#allocation7 + $0xf8] sm:$0xff]  ;;  %v228_v16 = vld [vmem:[#allocation7 + $0xf0] sm:$0xff]  ;;  %v227_v17 = vld [vmem:[#allocation7 + $0xe8] sm:$0xff] }
  0x3a   :  { %130 = vmatpush1.msra.mxu0 %v107_v6  ;;  %v98_v18 = vld [vmem:[#allocation5 + $0x88] sm:$0xff]  ;;  %274 = vmatprep.subr.mxu1 %v229_v15  ;;  %v226_v19 = vld [vmem:[#allocation7 + $0xe0] sm:$0xff]  ;;  %v225_v21 = vld [vmem:[#allocation7 + $0xd8] sm:$0xff] }
  0x3b   :  { %131 = vmatprep.subr.mxu0 %v106_v7  ;;  %v97_v20 = vld [vmem:[#allocation5 + $0x80] sm:$0xff]  ;;  %275 = vmatpush1.msra.mxu1 %v228_v16  ;;  %v96_v22 = vld [vmem:[#allocation5 + $0x78] sm:$0xff]  ;;  %v224_v23 = vld [vmem:[#allocation7 + $0xd0] sm:$0xff] }
  0x3c   :  { %132 = vmatpush1.msra.mxu0 %v105_v8  ;;  %276 = vmatprep.subr.mxu1 %v227_v17  ;;  %v95_v24 = vld [vmem:[#allocation5 + $0x70] sm:$0xff]  ;;  %v223_v25 = vld [vmem:[#allocation7 + $0xc8] sm:$0xff]  ;;  %v222_v27 = vld [vmem:[#allocation7 + $0xc0] sm:$0xff] }
  0x3d   :  { %133 = vmatprep.subr.mxu0 %v104_v9  ;;  %277 = vmatpush1.msra.mxu1 %v226_v19  ;;  %v94_v26 = vld [vmem:[#allocation5 + $0x68] sm:$0xff]  ;;  %v93_v28 = vld [vmem:[#allocation5 + $0x60] sm:$0xff]  ;;  %v221_v29 = vld [vmem:[#allocation7 + $0xb8] sm:$0xff] }
  0x3e   :  { %134 = vmatpush1.msra.mxu0 %v103_v10  ;;  %278 = vmatprep.subr.mxu1 %v225_v21  ;;  %v92_v30 = vld [vmem:[#allocation5 + $0x58] sm:$0xff]  ;;  %v220_v31 = vld [vmem:[#allocation7 + $0xb0] sm:$0xff]  ;;  %v219_v33 = vld [vmem:[#allocation7 + $0xa8] sm:$0xff] }
  0x3f   :  { %135 = vmatprep.subr.mxu0 %v102_v11  ;;  %279 = vmatpush1.msra.mxu1 %v224_v23  ;;  %v91_v32 = vld [vmem:[#allocation5 + $0x50] sm:$0xff]  ;;  %v90_v34 = vld [vmem:[#allocation5 + $0x48] sm:$0xff]  ;;  %v218_v35 = vld [vmem:[#allocation7 + $0xa0] sm:$0xff] }
  0x40   :  { %136 = vmatpush1.msra.mxu0 %v101_v12  ;;  %280 = vmatprep.subr.mxu1 %v223_v25  ;;  %v89_v36 = vld [vmem:[#allocation5 + $0x40] sm:$0xff]  ;;  %v217_v37 = vld [vmem:[#allocation7 + $0x98] sm:$0xff]  ;;  %v216_v39 = vld [vmem:[#allocation7 + $0x90] sm:$0xff] }
  0x41   :  { %137 = vmatprep.subr.mxu0 %v100_v13  ;;  %281 = vmatpush1.msra.mxu1 %v222_v27  ;;  %v88_v38 = vld [vmem:[#allocation5 + $0x38] sm:$0xff]  ;;  %v87_v40 = vld [vmem:[#allocation5 + $0x30] sm:$0xff]  ;;  %v215_v41 = vld [vmem:[#allocation7 + $0x88] sm:$0xff] }
  0x42   :  { %138 = vmatpush1.msra.mxu0 %v99_v14  ;;  %282 = vmatprep.subr.mxu1 %v221_v29  ;;  %v86_v42 = vld [vmem:[#allocation5 + $0x28] sm:$0xff]  ;;  %v214_v43 = vld [vmem:[#allocation7 + $0x80] sm:$0xff]  ;;  %v213_v45 = vld [vmem:[#allocation7 + $0x78] sm:$0xff] }
  0x43   :  { %139 = vmatprep.subr.mxu0 %v98_v18  ;;  %283 = vmatpush1.msra.mxu1 %v220_v31  ;;  %v85_v44 = vld [vmem:[#allocation5 + $0x20] sm:$0xff]  ;;  %v84_v46 = vld [vmem:[#allocation5 + $0x18] sm:$0xff]  ;;  %v212_v47 = vld [vmem:[#allocation7 + $0x70] sm:$0xff] }
  0x44   :  { %140 = vmatpush1.msra.mxu0 %v97_v20  ;;  %284 = vmatprep.subr.mxu1 %v219_v33  ;;  %v83_v48 = vld [vmem:[#allocation5 + $0x10] sm:$0xff]  ;;  %v211_v49 = vld [vmem:[#allocation7 + $0x68] sm:$0xff]  ;;  %v210_v51 = vld [vmem:[#allocation7 + $0x60] sm:$0xff] }
  0x45   :  { %141 = vmatprep.subr.mxu0 %v96_v22  ;;  %285 = vmatpush1.msra.mxu1 %v218_v35  ;;  %v82_v50 = vld [vmem:[#allocation5 + $0x8] sm:$0xff]  ;;  %v81_v52 = vld [vmem:[#allocation5] sm:$0xff]  ;;  %v209_v53 = vld [vmem:[#allocation7 + $0x58] sm:$0xff] }
  0x46   :  { %142 = vmatpush1.msra.mxu0 %v95_v24  ;;  %286 = vmatprep.subr.mxu1 %v217_v37  ;;  %v80_v54 = vld [vmem:[#allocation2] sm:$0xff]  ;;  %v208_v55 = vld [vmem:[#allocation7 + $0x50] sm:$0xff]  ;;  %v207_v56 = vld [vmem:[#allocation7 + $0x48] sm:$0xff] }
  0x47   :  { %143 = vmatprep.subr.mxu0 %v94_v26  ;;  %287 = vmatpush1.msra.mxu1 %v216_v39  ;;  %v206_v57 = vld [vmem:[#allocation7 + $0x40] sm:$0xff]  ;;  %v205_v58 = vld [vmem:[#allocation7 + $0x38] sm:$0xff]  ;;  %v204_v59 = vld [vmem:[#allocation7 + $0x30] sm:$0xff] }
  0x48   :  { %144 = vmatpush1.msra.mxu0 %v93_v28  ;;  %288 = vmatprep.subr.mxu1 %v215_v41  ;;  %v203_v60 = vld [vmem:[#allocation7 + $0x28] sm:$0xff]  ;;  %v202_v61 = vld [vmem:[#allocation7 + $0x20] sm:$0xff]  ;;  %v201_v62 = vld [vmem:[#allocation7 + $0x18] sm:$0xff] }
  0x49   :  { %145 = vmatprep.subr.mxu0 %v92_v30  ;;  %289 = vmatpush1.msra.mxu1 %v214_v43  ;;  %v200_v63 = vld [vmem:[#allocation7 + $0x10] sm:$0xff]  ;;  %v199_v0 = vld [vmem:[#allocation7 + $0x8] sm:$0xff]  ;;  %v198_v1 = vld [vmem:[#allocation7] sm:$0xff] }
  0x4a   :  { %146 = vmatpush1.msra.mxu0 %v91_v32  ;;  %290 = vmatprep.subr.mxu1 %v213_v45  ;;  %v261_v2 = vld [vmem:[#allocation7 + $0x1f8] sm:$0xff]  ;;  %v260_v3 = vld [vmem:[#allocation7 + $0x1f0] sm:$0xff]  ;;  %v259_v4 = vld [vmem:[#allocation7 + $0x1e8] sm:$0xff] }
  0x4b   :  { %147 = vmatprep.subr.mxu0 %v90_v34  ;;  %291 = vmatpush1.msra.mxu1 %v212_v47  ;;  %v258_v5 = vld [vmem:[#allocation7 + $0x1e0] sm:$0xff]  ;;  %v257_v6 = vld [vmem:[#allocation7 + $0x1d8] sm:$0xff]  ;;  %v256_v7 = vld [vmem:[#allocation7 + $0x1d0] sm:$0xff] }
  0x4c   :  { %148 = vmatpush1.msra.mxu0 %v89_v36  ;;  %292 = vmatprep.subr.mxu1 %v211_v49  ;;  %v255_v8 = vld [vmem:[#allocation7 + $0x1c8] sm:$0xff]  ;;  %v254_v9 = vld [vmem:[#allocation7 + $0x1c0] sm:$0xff]  ;;  %v253_v10 = vld [vmem:[#allocation7 + $0x1b8] sm:$0xff] }
  0x4d   :  { %149 = vmatprep.subr.mxu0 %v88_v38  ;;  %293 = vmatpush1.msra.mxu1 %v210_v51  ;;  %v252_v11 = vld [vmem:[#allocation7 + $0x1b0] sm:$0xff]  ;;  %v251_v12 = vld [vmem:[#allocation7 + $0x1a8] sm:$0xff]  ;;  %v250_v13 = vld [vmem:[#allocation7 + $0x1a0] sm:$0xff] }
  0x4e   :  { %150 = vmatpush1.msra.mxu0 %v87_v40  ;;  %294 = vmatprep.subr.mxu1 %v209_v53  ;;  %v249_v14 = vld [vmem:[#allocation7 + $0x198] sm:$0xff]  ;;  %v248_v15 = vld [vmem:[#allocation7 + $0x190] sm:$0xff]  ;;  %v247_v16 = vld [vmem:[#allocation7 + $0x188] sm:$0xff] }
  0x4f   :  { %151 = vmatprep.subr.mxu0 %v86_v42  ;;  %295 = vmatpush1.msra.mxu1 %v208_v55  ;;  %v246_v17 = vld [vmem:[#allocation7 + $0x180] sm:$0xff]  ;;  %v245_v18 = vld [vmem:[#allocation7 + $0x178] sm:$0xff]  ;;  %v244_v19 = vld [vmem:[#allocation7 + $0x170] sm:$0xff] }
  0x50   :  { %152 = vmatpush1.msra.mxu0 %v85_v44  ;;  %296 = vmatprep.subr.mxu1 %v207_v56  ;;  %v243_v20 = vld [vmem:[#allocation7 + $0x168] sm:$0xff]  ;;  %v242_v21 = vld [vmem:[#allocation7 + $0x160] sm:$0xff]  ;;  %v241_v22 = vld [vmem:[#allocation7 + $0x158] sm:$0xff] }
  0x51   :  { %153 = vmatprep.subr.mxu0 %v84_v46  ;;  %297 = vmatpush1.msra.mxu1 %v206_v57  ;;  %v240_v23 = vld [vmem:[#allocation7 + $0x150] sm:$0xff]  ;;  %v239_v24 = vld [vmem:[#allocation7 + $0x148] sm:$0xff]  ;;  %v238_v25 = vld [vmem:[#allocation7 + $0x140] sm:$0xff]  ;;  %v115_v46 = vlaneseq }
  0x52   :  { %154 = vmatpush1.msra.mxu0 %v83_v48  ;;  %298 = vmatprep.subr.mxu1 %v205_v58  ;;  %v237_v26 = vld [vmem:[#allocation7 + $0x138] sm:$0xff]  ;;  %v236_v27 = vld [vmem:[#allocation7 + $0x130] sm:$0xff]  ;;  %v235_v28 = vld [vmem:[#allocation7 + $0x128] sm:$0xff] }
  0x53   :  { %155 = vmatprep.subr.mxu0 %v82_v50  ;;  %299 = vmatpush1.msra.mxu1 %v204_v59  ;;  %v234_v29 = vld [vmem:[#allocation7 + $0x120] sm:$0xff]  ;;  %v233_v30 = vld [vmem:[#allocation7 + $0x118] sm:$0xff]  ;;  %v232_v31 = vld [vmem:[#allocation7 + $0x110] sm:$0xff]  ;;  %v116_v47 = vshrl.u32 %v115_v46, 7 }
  0x54   :  { %156 = vmatpush1.msra.mxu0 %v81_v52  ;;  %300 = vmatprep.subr.mxu1 %v203_v60  ;;  %v231_v32 = vld [vmem:[#allocation7 + $0x108] sm:$0xff]  ;;  %v230_v33 = vld [vmem:[#allocation7 + $0x100] sm:$0xff]  ;;  %v378_v34 = vld [vmem:[#allocation8 + $0xf8] sm:$0xff] }
  0x55   :  { %190 = vmatmul.mubr.f32.vlgmr.msra.gmra.mxu0 %v80_v54  ;;  %301 = vmatpush1.msra.mxu1 %v202_v61  ;;  %v362_v35 = vld [vmem:[#allocation8 + $0x78] sm:$0xff]  ;;  %v377_v36 = vld [vmem:[#allocation8 + $0xf0] sm:$0xff]  ;;  %v376_v38 = vld [vmem:[#allocation8 + $0xe8] sm:$0xff]  ;;  %v117_v48 = vsub.s32 0, %v116_v47  ;;  %v121_v50 = vsub.s32 1, %v116_v47 }
  0x56   :  { %302 = vmatprep.subr.mxu1 %v201_v62  ;;  %475 = vmatprep.subr.mxu0 %v378_v34  ;;  %v361_v37 = vld [vmem:[#allocation8 + $0x70] sm:$0xff]  ;;  %v360_v39 = vld [vmem:[#allocation8 + $0x68] sm:$0xff]  ;;  %v375_v40 = vld [vmem:[#allocation8 + $0xe0] sm:$0xff] }
  0x57   :  { %303 = vmatpush1.msra.mxu1 %v200_v63  ;;  %476 = vmatpush3.msra.mxu0 %v362_v35  ;;  %v359_v41 = vld [vmem:[#allocation8 + $0x60] sm:$0xff]  ;;  %v374_v42 = vld [vmem:[#allocation8 + $0xd8] sm:$0xff]  ;;  %v373_v44 = vld [vmem:[#allocation8 + $0xd0] sm:$0xff] }
  0x58   :  { %304 = vmatprep.subr.mxu1 %v199_v0  ;;  %477 = vmatprep.subr.mxu0 %v377_v36  ;;  %v358_v43 = vld [vmem:[#allocation8 + $0x58] sm:$0xff]  ;;  %v357_v45 = vld [vmem:[#allocation8 + $0x50] sm:$0xff]  ;;  %v372_v59 = vld [vmem:[#allocation8 + $0xc8] sm:$0xff] }
  0x59   :  { %305 = vmatpush1.msra.mxu1 %v198_v1  ;;  %478 = vmatpush3.msra.mxu0 %v361_v37  ;;  %v113_v49 = vld [vmem:[%s712_s2] sm:$0x3]  ;;  %v356_v60 = vld [vmem:[#allocation8 + $0x48] sm:$0xff]  ;;  %v371_v61 = vld [vmem:[#allocation8 + $0xc0] sm:$0xff] }
  0x5a   :  { %306 = vmatprep.subr.mxu1 %v261_v2  ;;  %479 = vmatprep.subr.mxu0 %v376_v38  ;;  %v118_v51 = vrot.slane %v113_v49, %v117_v48  ;;  %v122_v52 = vrot.slane %v113_v49, %v121_v50  ;;  %v355_v62 = vld [vmem:[#allocation8 + $0x40] sm:$0xff]  ;;  %v370_v63 = vld [vmem:[#allocation8 + $0xb8] sm:$0xff]  ;;  %v369_v1 = vld [vmem:[#allocation8 + $0xb0] sm:$0xff] }
  0x5b   :  { %307 = vmatpush2.msra.mxu1 %v260_v3  ;;  %480 = vmatpush3.msra.mxu0 %v360_v39  ;;  %v354_v0 = vld [vmem:[#allocation8 + $0x38] sm:$0xff]  ;;  %v353_v2 = vld [vmem:[#allocation8 + $0x30] sm:$0xff]  ;;  %v368_v3 = vld [vmem:[#allocation8 + $0xa8] sm:$0xff] }
  0x5c   :  { %308 = vmatprep.subr.mxu1 %v259_v4  ;;  %481 = vmatprep.subr.mxu0 %v375_v40  ;;  %v352_v4 = vld [vmem:[#allocation8 + $0x28] sm:$0xff] }
  0x5d   :  { %309 = vmatpush2.msra.mxu1 %v258_v5  ;;  %482 = vmatpush3.msra.mxu0 %v359_v41  ;;  %v367_v5 = vld [vmem:[#allocation8 + $0xa0] sm:$0xff] }
  0x5e   :  { %310 = vmatprep.subr.mxu1 %v257_v6  ;;  %483 = vmatprep.subr.mxu0 %v374_v42  ;;  %v351_v6 = vld [vmem:[#allocation8 + $0x20] sm:$0xff] }
  0x5f   :  { %311 = vmatpush2.msra.mxu1 %v256_v7  ;;  %484 = vmatpush3.msra.mxu0 %v358_v43  ;;  %v366_v7 = vld [vmem:[#allocation8 + $0x98] sm:$0xff] }
  0x60   :  { %312 = vmatprep.subr.mxu1 %v255_v8  ;;  %485 = vmatprep.subr.mxu0 %v373_v44  ;;  %v350_v8 = vld [vmem:[#allocation8 + $0x18] sm:$0xff] }
  0x61   :  { %313 = vmatpush2.msra.mxu1 %v254_v9  ;;  %486 = vmatpush3.msra.mxu0 %v357_v45  ;;  %v365_v9 = vld [vmem:[#allocation8 + $0x90] sm:$0xff] }
  0x62   :  { %314 = vmatprep.subr.mxu1 %v253_v10  ;;  %487 = vmatprep.subr.mxu0 %v372_v59  ;;  %v349_v10 = vld [vmem:[#allocation8 + $0x10] sm:$0xff] }
  0x63   :  { %315 = vmatpush2.msra.mxu1 %v252_v11  ;;  %488 = vmatpush3.msra.mxu0 %v356_v60  ;;  %v364_v11 = vld [vmem:[#allocation8 + $0x88] sm:$0xff] }
  0x64   :  { %316 = vmatprep.subr.mxu1 %v251_v12  ;;  %489 = vmatprep.subr.mxu0 %v371_v61  ;;  %v348_v12 = vld [vmem:[#allocation8 + $0x8] sm:$0xff] }
  0x65   :  { %317 = vmatpush2.msra.mxu1 %v250_v13  ;;  %490 = vmatpush3.msra.mxu0 %v355_v62  ;;  %v363_v13 = vld [vmem:[#allocation8 + $0x80] sm:$0xff] }
  0x66   :  { %318 = vmatprep.subr.mxu1 %v249_v14  ;;  %491 = vmatprep.subr.mxu0 %v370_v63  ;;  %v347_v14 = vld [vmem:[#allocation8] sm:$0xff] }
  0x67   :  { %319 = vmatpush2.msra.mxu1 %v248_v15  ;;  %492 = vmatpush3.msra.mxu0 %v354_v0  ;;  %v262_v15 = vld [vmem:[%s714_s4] sm:$0x3]  ;;  %s463_s4 = sshll.u32 %s645_s26, 4  ;;  %s464_s4 = int_to_ptr.vmem [resolvable:$true] %s463_s4 }
  0x68   :  { %320 = vmatprep.subr.mxu1 %v247_v16  ;;  %493 = vmatprep.subr.mxu0 %v369_v1  ;;  %v267_v16 = vrot.slane %v262_v15, %v117_v48  ;;  %s608_s27 = scalar_lea.vmem %s464_s4, 128  ;;  %p613_p7 = scmp.lt.s32.totalorder %s464_s4, %s464_s4 }
  0x69   :  { %321 = vmatpush2.msra.mxu1 %v246_v17  ;;  %494 = vmatpush3.msra.mxu0 %v353_v2  ;;  %v271_v17 = vrot.slane %v262_v15, %v121_v50  ;;  %p609_p6 = scmp.ne.s32.totalorder %s464_s4, %s608_s27  ;;  %p614_p8 = scmp.lt.s32.totalorder %s608_s27, %s608_s27 }
  0x6a   :  { %322 = vmatprep.subr.mxu1 %v245_v18  ;;  %495 = vmatprep.subr.mxu0 %v368_v3 }
  0x6b   :  { %323 = vmatpush2.msra.mxu1 %v244_v19  ;;  %496 = vmatpush3.msra.mxu0 %v352_v4  ;;  %p615_p9 = por %p614_p8, %p613_p7 }
  0x6c   :  { %324 = vmatprep.subr.mxu1 %v243_v20  ;;  %497 = vmatprep.subr.mxu0 %v367_v5 }
  0x6d   :  { %325 = vmatpush2.msra.mxu1 %v242_v21  ;;  %498 = vmatpush3.msra.mxu0 %v351_v6  ;;  %p616_p10 = pnand %p615_p9, %p609_p6 }
  0x6e   :  { %326 = vmatprep.subr.mxu1 %v241_v22  ;;  %499 = vmatprep.subr.mxu0 %v366_v7 }
  0x6f   :  { %327 = vmatpush2.msra.mxu1 %v240_v23  ;;  %500 = vmatpush3.msra.mxu0 %v350_v8 }
  0x70   :  { %328 = vmatprep.subr.mxu1 %v239_v24  ;;  %501 = vmatprep.subr.mxu0 %v365_v9 }
  0x71   :  { %329 = vmatpush2.msra.mxu1 %v238_v25  ;;  %502 = vmatpush3.msra.mxu0 %v349_v10  ;;  %v474_v25 = vld [vmem:[%s716_s6] ss:$0 sm:$0xff] }
  0x72   :  { %330 = vmatprep.subr.mxu1 %v237_v26  ;;  %503 = vmatprep.subr.mxu0 %v364_v11 }
  0x73   :  { %331 = vmatpush2.msra.mxu1 %v236_v27  ;;  %504 = vmatpush3.msra.mxu0 %v348_v12 }
  0x74   :  { %332 = vmatprep.subr.mxu1 %v235_v28  ;;  %505 = vmatprep.subr.mxu0 %v363_v13 }
  0x75   :  { %333 = vmatpush2.msra.mxu1 %v234_v29  ;;  %506 = vmatpush3.msra.mxu0 %v347_v14 }
  0x76   :  { %334 = vmatprep.subr.mxu1 %v233_v30 }
  0x77   :  { %335 = vmatpush2.msra.mxu1 %v232_v31 }
  0x78   :  { %336 = vmatprep.subr.mxu1 %v231_v32 }
  0x79   :  { %337 = vmatpush2.msra.mxu1 %v230_v33 }
 0x115   :  { %v191_v53 = vpop.f32.mrf.mxu0 }
 0x116   :  { %v192_v54 = vadd.f32 %v191_v53, %v118_v51 }
 0x117   :  { %v193_v55 = vpop.f32.mrf.mxu0 }
 0x118   :  { %v194_v56 = vadd.f32 %v193_v55, %v122_v52 }
 0x11a   :  { %520 = vtanh.f32 %v194_v56 }
 0x11b   :  { %522 = vtanh.f32 %v192_v54 }
 0x127   :  { %v521_v57 = vpop.eup %520 }
 0x128   :  { %v523_v58 = vpop.eup %522  ;;  %338 = vmatprep.mubr.f32.mxu1 %v521_v57 }
 0x129   :  { %339 = vmatmul.mubr.f32.vlgmr.msra.gmra.mxu1 %v523_v58 }
 0x1e9   :  { %v340_v18 = vpop.f32.mrf.mxu1 }
 0x1ea   :  { %v341_v19 = vadd.f32 %v340_v18, %v267_v16 }
 0x1eb   :  { %v342_v20 = vpop.f32.mrf.mxu1 }
 0x1ec   :  { %v343_v21 = vadd.f32 %v342_v20, %v271_v17 }
 0x1ee   :  { %524 = vtanh.f32 %v343_v21 }
 0x1ef   :  { %526 = vtanh.f32 %v341_v19 }
 0x1fb   :  { %v525_v22 = vpop.eup %524 }
 0x1fc   :  { %v527_v23 = vpop.eup %526  ;;  %450 = vmatprep.mubr.f32.mxu0 %v525_v22 }
 0x1fd   :  { %451 = vmatmul.mubr.f32.vlgmr.msra.gmra.mxu0 %v527_v23 }
 0x2bd   :  { %v507_v24 = vpop.f32.mrf.mxu0 }
 0x2bf   :  { %v508_v26 = vpop.f32.mrf.mxu0 }
 0x2c0   :  { %v509_v27 = vadd.f32 %v508_v26, %v507_v24 }
 0x2c2   :  { %v453_v28 = vadd.f32 %v509_v27, %v474_v25 }
 0x2c4   :  { %456 = vst [vmem:[#allocation10] sm:$0xff] %v453_v28 }
 0x2c5   :  { %619 = shalt.err (!%p616_p10)
}
 0x2c6   :  { %466 = dma.vmem_to_hbm [thread:$0]  %s464_s4, 128, %s717_s7, [#allocation4]  }
 0x2c7   :  { %634 = dma.done.wait [#allocation4], 128  }
 0x2c8   :  { %635 = vsyncadd [#allocation4], 4294967168 }
 0x2c9   :  { %470 = vsyncpa [#allocation3], 1 }
 0x2ca   :  { %471 = vsyncpa [#allocation6], 1 }
 0x2cb   :  { %472 = vsyncpa [#allocation9], 1 }
 0x2cc   :  { %473 = vsyncpa [#allocation4], 1 }

</bundles_post_ra>
